<compile_context>
chip_gen: v7x
topology: tpu7x:2x2x1
jax: 0.10.0
libtpu: 0.0.40
codegen_flags: <defaults>
</compile_context>

<pallas_src>
import functools
import math

import jax
import jax.numpy as jnp
from jax.experimental import pallas as pl
from jax.experimental.pallas import tpu as pltpu

_AMP = 1.0 / math.sqrt(2.0 * math.pi)
_LOG_INV_AMP = 0.5 * math.log(2.0 * math.pi)      # log(1/amp)
_SQRT2 = math.sqrt(2.0)
_LANE = 128
_SUBLANE = 8


def _cdiv(a, b):
    return -(-a // b)


def _round_up(a, b):
    return _cdiv(a, b) * b


def _rle_loss_kernel(pred_ref, sigma_ref, gt_ref, w_ref, nf_ref, w0_ref,
                     lq_out_ref, w_out_ref, *, rows, tb, steps, coord_dim):
    p = pl.program_id(0)          # parallel partition (megacore split on v7x)
    s = pl.program_id(1)          # reduction step within the partition

    @pl.when(s == 0)
    def _init():
        lq_out_ref[...] = jnp.zeros_like(lq_out_ref)
        w_out_ref[...] = jnp.zeros_like(w_out_ref)

    # Row-validity mask (handles the ragged last block and clamped dummy blocks).
    row_start = (p * steps + s) * tb
    row_idx = row_start + jax.lax.broadcasted_iota(jnp.int32, (tb, _LANE), 0)
    valid = row_idx < rows

    pred = pred_ref[...].astype(jnp.float32)
    sigma = sigma_ref[...].astype(jnp.float32)
    gt = gt_ref[...].astype(jnp.float32)
    w = w_ref[...].astype(jnp.float32)

    sigma = jnp.where(valid, sigma, 1.0)      # log(1)=0, never log(garbage)
    w = jnp.where(valid, w, 0.0)

    # logQ = log(sigma) + log(1/amp) + |gt - pred| / (sqrt(2)*sigma + 1e-9)
    log_q = (jnp.log(sigma) + _LOG_INV_AMP
             + jnp.abs(gt - pred) / (_SQRT2 * sigma + 1e-9))
    lq_w = jnp.where(valid, log_q * w, 0.0)   # kills Inf*0 from garbage rows

    # Lane-wide partial sums; only an axis-0 (sublane) reduce per step.
    lq_out_ref[0:1, :] += jnp.sum(lq_w, axis=0, keepdims=True)
    w_out_ref[0:1, :] += jnp.sum(w, axis=0, keepdims=True)

    # Broadcasted nf term, added exactly once (partition 0, last step):
    #   loss.sum() = D * sum(nf * w[:, :, 0]) + sum(logQ * w)
    @pl.when(jnp.logical_and(p == 0, s == steps - 1))
    def _add_nf():
        nf = nf_ref[...].astype(jnp.float32)
        w0 = w0_ref[...].astype(jnp.float32)
        lq_out_ref[0:1, :] += jnp.float32(coord_dim) * jnp.sum(
            nf * w0, axis=0, keepdims=True)


def _to_slab(x, pad_value, row_multiple=1):
    """Flatten x to a lane-dense (rows, 128) slab.

    Zero-copy (pure reshape) when x.size is a multiple of 128 and
    row_multiple == 1; otherwise a minimal pad (never a tile-sized pad).
    """
    flat = x.reshape(-1)
    n = flat.shape[0]
    rows = _round_up(max(1, _cdiv(n, _LANE)), row_multiple)
    total = rows * _LANE
    if total != n:
        flat = jnp.pad(flat, (0, total - n), constant_values=pad_value)
    return flat.reshape(rows, _LANE)


def rle_loss(pred_jts, sigma, nf_loss, target_uv, target_uv_weight,
             size_average=True, block_rows=2048):
    """Reproduces RLELoss.forward semantics with a Pallas TPU kernel.

    Call under jax.jit so the (rare, minimal) pad/reshape fuses upstream.
    On v7x, block_rows=4096 is a good choice.
    """
    B, K, D = pred_jts.shape
    gt_uv = target_uv.reshape(B, K, D)
    gt_w = target_uv_weight.reshape(B, K, D)

    # Main slabs: values/weights pad with 0, sigma pads with 1.0 so any padded
    # lane-tail element contributes exactly 0 to both accumulators.
    pred_s = _to_slab(pred_jts, 0.0)
    sigma_s = _to_slab(sigma, 1.0)
    gt_s = _to_slab(gt_uv, 0.0)
    w_s = _to_slab(gt_w, 0.0)

    # Tiny resident inputs for the nf term (B*K elements).
    nf_s = _to_slab(nf_loss.reshape(B, K), 0.0, row_multiple=_SUBLANE)
    w0_s = _to_slab(gt_w[:, :, 0], 0.0, row_multiple=_SUBLANE)

    rows = pred_s.shape[0]
    tb = min(_round_up(block_rows, _SUBLANE), _round_up(rows, _SUBLANE))
    num_blocks = _cdiv(rows, tb)
    # Leading "parallel" axis: splits row blocks across the two v7x TCs.
    P = 2 if num_blocks >= 2 else 1
    steps = _cdiv(num_blocks, P)

    def main_map(p, s):
        # Clamp dummy trailing steps of the last partition to a valid block;
        # the in-kernel row mask zeroes their contribution.
        return (jnp.minimum(p * steps + s, num_blocks - 1), 0)

    kernel = functools.partial(_rle_loss_kernel, rows=rows, tb=tb,
                               steps=steps, coord_dim=D)

    lq_part, w_part = pl.pallas_call(
        kernel,
        out_shape=(jax.ShapeDtypeStruct((P * _SUBLANE, _LANE), jnp.float32),
                   jax.ShapeDtypeStruct((P * _SUBLANE, _LANE), jnp.float32)),
        grid_spec=pltpu.PrefetchScalarGridSpec(
            num_scalar_prefetch=0,
            grid=(P, steps),
            in_specs=[
                pl.BlockSpec((tb, _LANE), main_map),            # pred
                pl.BlockSpec((tb, _LANE), main_map),            # sigma
                pl.BlockSpec((tb, _LANE), main_map),            # gt
                pl.BlockSpec((tb, _LANE), main_map),            # weight
                pl.BlockSpec(nf_s.shape, lambda p, s: (0, 0)),  # nf (resident)
                pl.BlockSpec(w0_s.shape, lambda p, s: (0, 0)),  # w[...,0] (resident)
            ],
            out_specs=[pl.BlockSpec((_SUBLANE, _LANE), lambda p, s: (p, 0)),
                       pl.BlockSpec((_SUBLANE, _LANE), lambda p, s: (p, 0))],
        ),
        compiler_params=pltpu.CompilerParams(
            dimension_semantics=("parallel", "arbitrary"),
            vmem_limit_bytes=32 * 1024 * 1024),
    )(pred_s, sigma_s, gt_s, w_s, nf_s, w0_s)

    # Tiny epilogue: cross-lane/partition collapse + size_average normalization.
    loss_sum = jnp.sum(lq_part)          # already includes D * sum(nf * w0)
    w_sum = jnp.sum(w_part)
    if size_average:
        return jnp.where(w_sum > 0.0, loss_sum / jnp.float32(B), loss_sum)
    return loss_sum


def _reference(pred_jts, sigma, nf_loss, target_uv, target_uv_weight,
               size_average=True):
    gt_uv = target_uv.reshape(pred_jts.shape)
    gt_w = target_uv_weight.reshape(pred_jts.shape)
    nf = nf_loss * gt_w[:, :, :1]
    log_q = jnp.log(sigma / _AMP) + jnp.abs(gt_uv - pred_jts) / (_SQRT2 * sigma + 1e-9)
    loss = nf + log_q * gt_w
    if size_average:
        return jnp.where(gt_w.sum() > 0, loss.sum() / loss.shape[0], loss.sum())
    return loss.sum()


if __name__ == "__main__":
    # Small shapes consistent with the module: batch=2, num_joints=8, coords=2.
    B, K, D = 2, 8, 2
    key = jax.random.PRNGKey(0)
    k1, k2, k3, k4, k5 = jax.random.split(key, 5)

    pred_jts = jax.random.normal(k1, (B, K, D), dtype=jnp.float32)
    sigma = jax.nn.sigmoid(jax.random.normal(k2, (B, K, D), dtype=jnp.float32)) + 1e-3
    nf_loss = jax.random.normal(k3, (B, K, 1), dtype=jnp.float32)
    target_uv = jax.random.normal(k4, (B, K * D), dtype=jnp.float32)
    target_uv_weight = (jax.random.uniform(k5, (B, K * D)) > 0.3).astype(jnp.float32)

    loss_fn = jax.jit(functools.partial(rle_loss, size_average=True))
    out = loss_fn(pred_jts, sigma, nf_loss, target_uv, target_uv_weight)
    out = jax.block_until_ready(out)

    ref = _reference(pred_jts, sigma, nf_loss, target_uv, target_uv_weight,
                     size_average=True)
    assert jnp.allclose(out, ref, rtol=1e-5, atol=1e-5), (out, ref)

    print("KERNEL_OK")
</pallas_src>

<mosaic_0001>
module attributes {stable_mosaic.version = 11 : i64} {
  func.func @_rle_loss_kernel(%arg0: i32, %arg1: i32, %arg2: memref<8x128xf32, #tpu.memory_space<vmem>>, %arg3: memref<8x128xf32, #tpu.memory_space<vmem>>, %arg4: memref<8x128xf32, #tpu.memory_space<vmem>>, %arg5: memref<8x128xf32, #tpu.memory_space<vmem>>, %arg6: memref<8x128xf32, #tpu.memory_space<vmem>>, %arg7: memref<8x128xf32, #tpu.memory_space<vmem>>, %arg8: memref<8x128xf32, #tpu.memory_space<vmem>>, %arg9: memref<8x128xf32, #tpu.memory_space<vmem>>) attributes {dimension_semantics = [#tpu.dimension_semantics<parallel>, #tpu.dimension_semantics<arbitrary>], iteration_bounds = array<i64: 1, 1>, scalar_prefetch = 0 : i64, scratch_operands = 0 : i64, tpu.core_type = #tpu.core_type<tc>, window_params = [{transform_indices = @transform_0, window_bounds = array<i64: 8, 128>}, {transform_indices = @transform_1, window_bounds = array<i64: 8, 128>}, {transform_indices = @transform_2, window_bounds = array<i64: 8, 128>}, {transform_indices = @transform_3, window_bounds = array<i64: 8, 128>}, {pipeline_mode = #tpu.pipeline_mode<synchronous>, transform_indices = @transform_4, window_bounds = array<i64: 8, 128>}, {pipeline_mode = #tpu.pipeline_mode<synchronous>, transform_indices = @transform_5, window_bounds = array<i64: 8, 128>}, {transform_indices = @transform_6, window_bounds = array<i64: 8, 128>}, {transform_indices = @transform_7, window_bounds = array<i64: 8, 128>}]} {
    %c0_i32 = arith.constant 0 : i32
    %0 = arith.cmpi eq, %arg1, %c0_i32 : i32
    %1 = arith.extui %0 : i1 to i32
    %c0_i32_0 = arith.constant 0 : i32
    %2 = arith.cmpi ne, %1, %c0_i32_0 : i32
    scf.if %2 {
      %cst_27 = arith.constant 0.000000e+00 : f32
      %48 = vector.broadcast %cst_27 : f32 to vector<8x128xf32>
      %c0_28 = arith.constant 0 : index
      %c0_29 = arith.constant 0 : index
      %49 = vector.load %arg8[%c0_28, %c0_29] : memref<8x128xf32, #tpu.memory_space<vmem>>, vector<8x128xf32>
      tpu.vector_store %arg8[%c0_28, %c0_29], %48 {strides = array<i32>} : memref<8x128xf32, #tpu.memory_space<vmem>>, vector<8x128xf32>,
      %cst_30 = arith.constant 0.000000e+00 : f32
      %50 = vector.broadcast %cst_30 : f32 to vector<8x128xf32>
      %c0_31 = arith.constant 0 : index
      %c0_32 = arith.constant 0 : index
      %51 = vector.load %arg9[%c0_31, %c0_32] : memref<8x128xf32, #tpu.memory_space<vmem>>, vector<8x128xf32>
      tpu.vector_store %arg9[%c0_31, %c0_32], %50 {strides = array<i32>} : memref<8x128xf32, #tpu.memory_space<vmem>>, vector<8x128xf32>,
    } else {
    }
    %c1_i32 = arith.constant 1 : i32
    %3 = arith.muli %arg0, %c1_i32 : i32
    %4 = arith.addi %3, %arg1 : i32
    %c8_i32 = arith.constant 8 : i32
    %5 = arith.muli %4, %c8_i32 : i32
    %6 = tpu.iota {dimensions = array<i32: 0>} : vector<8x128xi32>
    %7 = vector.broadcast %5 : i32 to vector<8x128xi32>
    %8 = arith.addi %7, %6 : vector<8x128xi32>
    %c1_i32_1 = arith.constant 1 : i32
    %9 = vector.broadcast %c1_i32_1 : i32 to vector<8x128xi32>
    %10 = arith.cmpi slt, %8, %9 : vector<8x128xi32>
    %c0 = arith.constant 0 : index
    %c0_2 = arith.constant 0 : index
    %11 = vector.load %arg2[%c0, %c0_2] : memref<8x128xf32, #tpu.memory_space<vmem>>, vector<8x128xf32>
    %c0_3 = arith.constant 0 : index
    %c0_4 = arith.constant 0 : index
    %12 = vector.load %arg3[%c0_3, %c0_4] : memref<8x128xf32, #tpu.memory_space<vmem>>, vector<8x128xf32>
    %c0_5 = arith.constant 0 : index
    %c0_6 = arith.constant 0 : index
    %13 = vector.load %arg4[%c0_5, %c0_6] : memref<8x128xf32, #tpu.memory_space<vmem>>, vector<8x128xf32>
    %c0_7 = arith.constant 0 : index
    %c0_8 = arith.constant 0 : index
    %14 = vector.load %arg5[%c0_7, %c0_8] : memref<8x128xf32, #tpu.memory_space<vmem>>, vector<8x128xf32>
    %cst = arith.constant 1.000000e+00 : f32
    %15 = vector.broadcast %cst : f32 to vector<8x128xf32>
    %16 = arith.select %10, %12, %15 : vector<8x128xi1>, vector<8x128xf32>
    %cst_9 = arith.constant 0.000000e+00 : f32
    %17 = vector.broadcast %cst_9 : f32 to vector<8x128xf32>
    %18 = arith.select %10, %14, %17 : vector<8x128xi1>, vector<8x128xf32>
    %19 = math.log %16 : vector<8x128xf32>
    %cst_10 = arith.constant 0.918938517 : f32
    %20 = vector.broadcast %cst_10 : f32 to vector<8x128xf32>
    %21 = arith.addf %19, %20 : vector<8x128xf32>
    %22 = arith.subf %13, %11 : vector<8x128xf32>
    %23 = math.absf %22 : vector<8x128xf32>
    %cst_11 = arith.constant 1.41421354 : f32
    %24 = vector.broadcast %cst_11 : f32 to vector<8x128xf32>
    %25 = arith.mulf %24, %16 : vector<8x128xf32>
    %cst_12 = arith.constant 9.99999971E-10 : f32
    %26 = vector.broadcast %cst_12 : f32 to vector<8x128xf32>
    %27 = arith.addf %25, %26 : vector<8x128xf32>
    %28 = arith.divf %23, %27 : vector<8x128xf32>
    %29 = arith.addf %21, %28 : vector<8x128xf32>
    %30 = arith.mulf %29, %18 : vector<8x128xf32>
    %cst_13 = arith.constant 0.000000e+00 : f32
    %31 = vector.broadcast %cst_13 : f32 to vector<8x128xf32>
    %32 = arith.select %10, %30, %31 : vector<8x128xi1>, vector<8x128xf32>
    %c0_14 = arith.constant 0 : index
    %c0_15 = arith.constant 0 : index
    %33 = vector.load %arg8[%c0_14, %c0_15] : memref<8x128xf32, #tpu.memory_space<vmem>>, vector<1x128xf32>
    %cst_16 = arith.constant dense<0.000000e+00> : vector<128xf32>
    %34 = vector.multi_reduction <add>, %32, %cst_16 [0] : vector<8x128xf32> to vector<128xf32>
    %35 = vector.shape_cast %34 : vector<128xf32> to vector<1x128xf32>
    %36 = arith.addf %33, %35 : vector<1x128xf32>
    %c0_17 = arith.constant 0 : index
    %c0_18 = arith.constant 0 : index
    %37 = vector.load %arg8[%c0_17, %c0_18] : memref<8x128xf32, #tpu.memory_space<vmem>>, vector<1x128xf32>
    tpu.vector_store %arg8[%c0_17, %c0_18], %36 {strides = array<i32>} : memref<8x128xf32, #tpu.memory_space<vmem>>, vector<1x128xf32>,
    %c0_19 = arith.constant 0 : index
    %c0_20 = arith.constant 0 : index
    %38 = vector.load %arg9[%c0_19, %c0_20] : memref<8x128xf32, #tpu.memory_space<vmem>>, vector<1x128xf32>
    %cst_21 = arith.constant dense<0.000000e+00> : vector<128xf32>
    %39 = vector.multi_reduction <add>, %18, %cst_21 [0] : vector<8x128xf32> to vector<128xf32>
    %40 = vector.shape_cast %39 : vector<128xf32> to vector<1x128xf32>
    %41 = arith.addf %38, %40 : vector<1x128xf32>
    %c0_22 = arith.constant 0 : index
    %c0_23 = arith.constant 0 : index
    %42 = vector.load %arg9[%c0_22, %c0_23] : memref<8x128xf32, #tpu.memory_space<vmem>>, vector<1x128xf32>
    tpu.vector_store %arg9[%c0_22, %c0_23], %41 {strides = array<i32>} : memref<8x128xf32, #tpu.memory_space<vmem>>, vector<1x128xf32>,
    %c0_i32_24 = arith.constant 0 : i32
    %43 = arith.cmpi eq, %arg0, %c0_i32_24 : i32
    %c0_i32_25 = arith.constant 0 : i32
    %44 = arith.cmpi eq, %arg1, %c0_i32_25 : i32
    %45 = arith.andi %43, %44 : i1
    %46 = arith.extui %45 : i1 to i32
    %c0_i32_26 = arith.constant 0 : i32
    %47 = arith.cmpi ne, %46, %c0_i32_26 : i32
    scf.if %47 {
      %c0_27 = arith.constant 0 : index
      %c0_28 = arith.constant 0 : index
      %48 = vector.load %arg6[%c0_27, %c0_28] : memref<8x128xf32, #tpu.memory_space<vmem>>, vector<8x128xf32>
      %c0_29 = arith.constant 0 : index
      %c0_30 = arith.constant 0 : index
      %49 = vector.load %arg7[%c0_29, %c0_30] : memref<8x128xf32, #tpu.memory_space<vmem>>, vector<8x128xf32>
      %c0_31 = arith.constant 0 : index
      %c0_32 = arith.constant 0 : index
      %50 = vector.load %arg8[%c0_31, %c0_32] : memref<8x128xf32, #tpu.memory_space<vmem>>, vector<1x128xf32>
      %51 = arith.mulf %48, %49 : vector<8x128xf32>
      %cst_33 = arith.constant dense<0.000000e+00> : vector<128xf32>
      %52 = vector.multi_reduction <add>, %51, %cst_33 [0] : vector<8x128xf32> to vector<128xf32>
      %53 = vector.shape_cast %52 : vector<128xf32> to vector<1x128xf32>
      %cst_34 = arith.constant 2.000000e+00 : f32
      %54 = vector.broadcast %cst_34 : f32 to vector<1x128xf32>
      %55 = arith.mulf %54, %53 : vector<1x128xf32>
      %56 = arith.addf %50, %55 : vector<1x128xf32>
      %c0_35 = arith.constant 0 : index
      %c0_36 = arith.constant 0 : index
      %57 = vector.load %arg8[%c0_35, %c0_36] : memref<8x128xf32, #tpu.memory_space<vmem>>, vector<1x128xf32>
      tpu.vector_store %arg8[%c0_35, %c0_36], %56 {strides = array<i32>} : memref<8x128xf32, #tpu.memory_space<vmem>>, vector<1x128xf32>,
    } else {
    }
    return
  }
  func.func @transform_0(%arg0: i32, %arg1: i32) -> (i32, i32) {
    %c1_i32 = arith.constant 1 : i32
    %0 = arith.muli %arg0, %c1_i32 : i32
    %1 = arith.addi %0, %arg1 : i32
    %c0_i32 = arith.constant 0 : i32
    %2 = arith.minsi %1, %c0_i32 : i32
    %c0_i32_0 = arith.constant 0 : i32
    %c0_i32_1 = arith.constant 0 : i32
    return %2, %c0_i32_0 : i32, i32
  }
  func.func @transform_1(%arg0: i32, %arg1: i32) -> (i32, i32) {
    %c1_i32 = arith.constant 1 : i32
    %0 = arith.muli %arg0, %c1_i32 : i32
    %1 = arith.addi %0, %arg1 : i32
    %c0_i32 = arith.constant 0 : i32
    %2 = arith.minsi %1, %c0_i32 : i32
    %c0_i32_0 = arith.constant 0 : i32
    %c0_i32_1 = arith.constant 0 : i32
    return %2, %c0_i32_0 : i32, i32
  }
  func.func @transform_2(%arg0: i32, %arg1: i32) -> (i32, i32) {
    %c1_i32 = arith.constant 1 : i32
    %0 = arith.muli %arg0, %c1_i32 : i32
    %1 = arith.addi %0, %arg1 : i32
    %c0_i32 = arith.constant 0 : i32
    %2 = arith.minsi %1, %c0_i32 : i32
    %c0_i32_0 = arith.constant 0 : i32
    %c0_i32_1 = arith.constant 0 : i32
    return %2, %c0_i32_0 : i32, i32
  }
  func.func @transform_3(%arg0: i32, %arg1: i32) -> (i32, i32) {
    %c1_i32 = arith.constant 1 : i32
    %0 = arith.muli %arg0, %c1_i32 : i32
    %1 = arith.addi %0, %arg1 : i32
    %c0_i32 = arith.constant 0 : i32
    %2 = arith.minsi %1, %c0_i32 : i32
    %c0_i32_0 = arith.constant 0 : i32
    %c0_i32_1 = arith.constant 0 : i32
    return %2, %c0_i32_0 : i32, i32
  }
  func.func @transform_4(%arg0: i32, %arg1: i32) -> (i32, i32) {
    %c0_i32 = arith.constant 0 : i32
    %c0_i32_0 = arith.constant 0 : i32
    %c0_i32_1 = arith.constant 0 : i32
    return %c0_i32, %c0_i32_0 : i32, i32
  }
  func.func @transform_5(%arg0: i32, %arg1: i32) -> (i32, i32) {
    %c0_i32 = arith.constant 0 : i32
    %c0_i32_0 = arith.constant 0 : i32
    %c0_i32_1 = arith.constant 0 : i32
    return %c0_i32, %c0_i32_0 : i32, i32
  }
  func.func @transform_6(%arg0: i32, %arg1: i32) -> (i32, i32) {
    %c0_i32 = arith.constant 0 : i32
    %c0_i32_0 = arith.constant 0 : i32
    return %arg0, %c0_i32 : i32, i32
  }
  func.func @transform_7(%arg0: i32, %arg1: i32) -> (i32, i32) {
    %c0_i32 = arith.constant 0 : i32
    %c0_i32_0 = arith.constant 0 : i32
    return %arg0, %c0_i32 : i32, i32
  }
}

</mosaic_0001>

<bundles_post_ra>
// kernel: rle_loss.1
= control target key start
LH: loop header
LB: loop body
LE: loop exit
PB: predicated region body
PF: predicated region fallthrough
CT: control target
= control target key end

     0   :  { %v189_v0 = vlaneseq  ;;  %v273_v1 = vmov 0.0   ;;  %s359_s6 = inlined_call_operand.vmem [shape: f32[8,128], index: 6, kind: output, shape index: {0}]   ;;  %s360_s7 = inlined_call_operand.vmem [shape: f32[8,128], index: 7, kind: output, shape index: {1}]   ;;  %s361_s1 = inlined_call_operand.vmem [shape: f32[1,128], index: 1, kind: input, shape index: {}]   ;;  %s362_s3 = inlined_call_operand.vmem [shape: f32[1,128], index: 3, kind: input, shape index: {}]   ;;  %s363_s0 = inlined_call_operand.vmem [shape: f32[1,128], index: 0, kind: input, shape index: {}]   ;;  %s364_s2 = inlined_call_operand.vmem [shape: f32[1,128], index: 2, kind: input, shape index: {}]   ;;  %s365_s4 = inlined_call_operand.vmem [shape: f32[8,128], index: 4, kind: input, shape index: {}]   ;;  %s366_s5 = inlined_call_operand.vmem [shape: f32[8,128], index: 5, kind: input, shape index: {}]  }
   0x1   :  { %185 = vst [vmem:[%s359_s6] sm:$0xff] %v273_v1  ;;  %186 = vst [vmem:[%s360_s7] sm:$0xff] %v273_v1  ;;  %v195_v3 = vld [vmem:[%s361_s1] sm:$0xff] }
   0x2   :  { %v190_v2 = vshrl.u32 %v189_v0, 7  ;;  %v197_v4 = vld [vmem:[%s362_s3] sm:$0xff] }
   0x3   :  { %v194_v11 = vld [vmem:[%s363_s0] sm:$0xff] }
   0x4   :  { %vm193_vm0 = vcmp.lt.s32.totalorder %v190_v2, 1  ;;  %v196_v12 = vld [vmem:[%s364_s2] sm:$0xff] }
   0x5   :  { %v198_v5 = vsel %vm193_vm0, %v195_v3, 1.0  ;;  %v199_v6 = vsel %vm193_vm0, %v197_v4, 0.0  ;;  %v203_v15 = vsub.f32 %v196_v12, %v194_v11  ;;  %v235_v18 = vld [vmem:[%s365_s4] sm:$0xff] }
   0x6   :  { %269 = vlog2.f32 %v198_v5  ;;  %v205_v7 = vmul.f32 1.4142135, %v198_v5  ;;  %v222_v8 = vrot.slane %v199_v6, 4  ;;  %v236_v19 = vld [vmem:[%s366_s5] sm:$0xff] }
   0x7   :  { %v204_v23 = vand.u32 2147483647, %v203_v15  ;;  %v238_v25 = vmul.f32 %v236_v19, %v235_v18 }
   0x8   :  { %v206_v9 = vadd.f32 1e-09, %v205_v7  ;;  %v223_v10 = vadd.f32 %v222_v8, %v199_v6  ;;  %v221_v17 = vld [vmem:[%s360_s7] sm:$0x1] }
   0x9   :  { %v239_v29 = vrot.slane %v238_v25, 4  ;;  %v212_v41 = vld [vmem:[%s359_s6] sm:$0x1] }
   0xa   :  { %271 = vrcp.f32 %v206_v9  ;;  %v224_v13 = vrot.slane %v223_v10, 2 }
   0xb   :  { %v240_v32 = vadd.f32 %v239_v29, %v238_v25 }
   0xc   :  { %v225_v14 = vadd.f32 %v224_v13, %v223_v10 }
   0xd   :  { %v241_v36 = vrot.slane %v240_v32, 2 }
   0xe   :  { %v226_v16 = vrot.slane %v225_v14, 1 }
   0xf   :  { %v242_v39 = vadd.f32 %v241_v36, %v240_v32 }
  0x10   :  { %v270_v20 = vpop.eup %269  ;;  %v227_v21 = vadd.f32 %v226_v16, %v225_v14 }
  0x11   :  { %v201_v22 = vmul.f32 0.6931472, %v270_v20  ;;  %v243_v43 = vrot.slane %v242_v39, 1 }
  0x12   :  { %v228_v24 = vadd.f32 %v227_v21, %v221_v17 }
  0x13   :  { %v202_v26 = vadd.f32 0.9189385, %v201_v22  ;;  %v244_v45 = vadd.f32 %v243_v43, %v242_v39 }
  0x14   :  { %v272_v27 = vpop.eup %271  ;;  %229 = vst [vmem:[%s360_s7] sm:$0x1] %v228_v24 }
  0x15   :  { %v208_v28 = vmul.f32 %v272_v27, %v204_v23  ;;  %v245_v46 = vmul.f32 2.0, %v244_v45 }
  0x17   :  { %v209_v30 = vadd.f32 %v208_v28, %v202_v26 }
  0x19   :  { %v210_v31 = vmul.f32 %v209_v30, %v199_v6 }
  0x1b   :  { %v211_v33 = vsel %vm193_vm0, %v210_v31, 0.0 }
  0x1c   :  { %v213_v34 = vrot.slane %v211_v33, 4 }
  0x1e   :  { %v214_v35 = vadd.f32 %v213_v34, %v211_v33 }
  0x20   :  { %v215_v37 = vrot.slane %v214_v35, 2 }
  0x22   :  { %v216_v38 = vadd.f32 %v215_v37, %v214_v35 }
  0x24   :  { %v217_v40 = vrot.slane %v216_v38, 1 }
  0x26   :  { %v218_v42 = vadd.f32 %v217_v40, %v216_v38 }
  0x28   :  { %v219_v44 = vadd.f32 %v218_v42, %v212_v41 }
  0x2a   :  { %220 = vst [vmem:[%s359_s6] sm:$0x1] %v219_v44 }
  0x31   :  { %v237_v47 = vld [vmem:[%s359_s6] sm:$0x1] }
  0x32   :  { %v246_v48 = vadd.f32 %v245_v46, %v237_v47 }
  0x34   :  { %247 = vst [vmem:[%s359_s6] sm:$0x1] %v246_v48 }

</bundles_post_ra>
